<compile_context>
chip_gen: v5e
topology: v5e:2x2
jax: 0.10.0
libtpu: 0.0.40
codegen_flags: <defaults>
</compile_context>

<pallas_src>
import functools

import jax
import jax.numpy as jnp
from jax.experimental import pallas as pl
from jax.experimental.pallas import tpu as pltpu


# ----------------------------------------------------------------------------- kernels


def _spd_kernel_fused(xe_ref, xo_ref, w_ref, b_ref, o_ref):
    """Single K=4*c1 matmul.  xe/xo: (t, Wo, 2*c1); w: (4*c1, c2p); b: (1, c2p)."""
    t, wn, cin2 = xe_ref.shape
    c2p = o_ref.shape[-1]
    m = t * wn
    # Free reshapes when Wo % 8 == 0; concat is an aligned vreg copy (cin2 % 128 == 0).
    x = jnp.concatenate(
        [xe_ref[...].reshape(m, cin2), xo_ref[...].reshape(m, cin2)], axis=-1)
    y = jnp.dot(x, w_ref[...], preferred_element_type=jnp.float32)
    y = y + b_ref[...]
    y = y * jax.nn.sigmoid(y)                       # SiLU
    o_ref[...] = y.reshape(t, wn, c2p).astype(o_ref.dtype)


def _spd_kernel_split(xe_ref, xo_ref, we_ref, wo_ref, b_ref, o_ref):
    """Two K=2*c1 matmuls (used when the channel concat would be lane-unaligned)."""
    t, wn, cin2 = xe_ref.shape
    c2p = o_ref.shape[-1]
    m = t * wn
    y = jnp.dot(xe_ref[...].reshape(m, cin2), we_ref[...],
                preferred_element_type=jnp.float32)
    y = y + jnp.dot(xo_ref[...].reshape(m, cin2), wo_ref[...],
                    preferred_element_type=jnp.float32)
    y = y + b_ref[...]
    y = y * jax.nn.sigmoid(y)                       # SiLU
    o_ref[...] = y.reshape(t, wn, c2p).astype(o_ref.dtype)


# ----------------------------------------------------------------------------- tiling


@functools.lru_cache(maxsize=1)
def _vmem_budget_bytes():
    """Generation-aware VMEM budget (safe fallback = v7x-sized 48 MiB)."""
    cap = None
    try:
        info = pltpu.get_tpu_info()
        cap = getattr(info, "vmem_capacity_bytes", None)
    except Exception:
        cap = None
    if not cap:
        cap = 64 * 1024 * 1024          # conservative: v7x per-TensorCore VMEM
    return int(min(cap * 3 // 4, 100 * 1024 * 1024))


def _pick_t_rows(R, Wo, cin2, c2p, in_bytes, budget_bytes,
                 target_flat_rows=8192, min_grid_steps=4):
    """VMEM-budget-aware row-pair tile size (does NOT need to divide R)."""
    # Per-t_row VMEM estimate:
    #   2 activation inputs, double-buffered : 4 * Wo*cin2*in_bytes
    #   output block, double-buffered        : 2 * Wo*c2p*in_bytes
    #   f32 matmul result + SiLU temporaries : ~3 * Wo*c2p*4
    #   fused-K concat buffer (single)       : 2 * Wo*cin2*in_bytes
    per_row = Wo * (6 * cin2 * in_bytes + 2 * c2p * in_bytes + 12 * c2p)
    fixed = 2 * (2 * cin2 * c2p * in_bytes) + 2 * c2p * 4  # weights + bias (2x buffered)
    avail = max(budget_bytes - fixed, per_row)
    t = min(avail // per_row, max(1, target_flat_rows // max(Wo, 1)), R)
    # Ensure the single "parallel" grid axis has enough steps to feed both v7x TCs
    # and keep the DMA/compute pipeline busy.
    t = min(t, max(1, -(-R // min_grid_steps)))
    if t >= 8:
        t = (t // 8) * 8                # sublane-aligned matmul M (with Wo % 8 == 0)
    return int(max(t, 1))


# ----------------------------------------------------------------------------- wrapper


@functools.partial(jax.jit, static_argnames=("channels_last",))
def spd_conv_forward(x, conv_w, bn_gamma, bn_beta, bn_mean, bn_var,
                     eps=1e-5, channels_last=False):
    """Forward of SPD_Conv (k=1, s=1, bias=False, eval-mode BN, SiLU).

    x       : (N, c1, H, W)  [channels_last=False, PyTorch layout]  or (N, H, W, c1)
    conv_w  : (c2, 4*c1, 1, 1)
    bn_*    : (c2,)
    returns : (N, c2, H//2, W//2)  (NHWC if channels_last=True)
    """
    if channels_last:
        N, H, W, c1 = x.shape
        x_nhwc = x
    else:
        N, c1, H, W = x.shape
        x_nhwc = jnp.transpose(x, (0, 2, 3, 1))       # single input layout pass
    if H % 2 or W % 2:
        raise ValueError("SPD_Conv requires even spatial dims")
    c2 = conv_w.shape[0]
    Ho, Wo = H // 2, W // 2
    cin2 = 2 * c1
    R = N * Ho                                        # number of output rows (row pairs)

    # Free reshape exposing the 2x2 pixel structure (no SPD copies in HBM):
    #   x_view[r, dy, j, dx*c1 + c] == x_nhwc[n, 2i+dy, 2j+dx, c], with r = n*Ho + i
    x_view = x_nhwc.reshape(R, 2, Wo, cin2)
    xdt = x_view.dtype
    in_bytes = x_view.dtype.itemsize

    # --- weights: split per quadrant, fold BN scale in, pad Cout to 128 lanes ---
    w_mat = conv_w.reshape(c2, 4 * c1).T.astype(jnp.float32)   # rows = [x1|x2|x3|x4]
    inv_std = jax.lax.rsqrt(bn_var.astype(jnp.float32) + eps)
    scale = bn_gamma.astype(jnp.float32) * inv_std
    bias = bn_beta.astype(jnp.float32) - bn_mean.astype(jnp.float32) * scale
    w1, w2, w3, w4 = (w_mat[q * c1:(q + 1) * c1] for q in range(4))
    # even source rows see [x1 | x3] channels; odd source rows see [x2 | x4]
    w_even = jnp.concatenate([w1, w3], axis=0) * scale[None, :]
    w_odd = jnp.concatenate([w2, w4], axis=0) * scale[None, :]

    c2p = pl.cdiv(c2, 128) * 128                      # lane-dense output stores
    if c2p != c2:
        pad = ((0, 0), (0, c2p - c2))
        w_even = jnp.pad(w_even, pad)
        w_odd = jnp.pad(w_odd, pad)
        bias = jnp.pad(bias, ((0, c2p - c2),))
    bias2 = bias.reshape(1, c2p)
    # Keep the activation dtype end-to-end (no f32 up-cast of the big streams).
    # Note: for bf16 inputs this folds BN scale into bf16 weights (tiny precision
    # loss vs. PyTorch); f32 inputs keep full f32 weights.
    w_even = w_even.astype(xdt)
    w_odd = w_odd.astype(xdt)

    budget = _vmem_budget_bytes()
    t_rows = _pick_t_rows(R, Wo, cin2, c2p, in_bytes, budget)
    grid = (pl.cdiv(R, t_rows),)

    # DMA-level even/odd split: same HBM array passed twice, squeezed dy dim.
    act_spec_even = pl.BlockSpec((t_rows, None, Wo, cin2), lambda i: (i, 0, 0, 0))
    act_spec_odd = pl.BlockSpec((t_rows, None, Wo, cin2), lambda i: (i, 1, 0, 0))
    bias_spec = pl.BlockSpec((1, c2p), lambda i: (0, 0))
    out_spec = pl.BlockSpec((t_rows, Wo, c2p), lambda i: (i, 0, 0))
    out_shape = jax.ShapeDtypeStruct((R, Wo, c2p), xdt)
    compiler_params = pltpu.CompilerParams(
        dimension_semantics=("parallel",),
        vmem_limit_bytes=budget,
    )

    # Fuse the two small-K matmuls into a single K=4*c1 matmul when the in-kernel
    # channel concat is lane-aligned (pure copy) and K would otherwise under-fill
    # the 128/256-wide MXU.
    fuse_k = (cin2 % 128 == 0) and (cin2 <= 256)

    if fuse_k:
        w_all = jnp.concatenate([w_even, w_odd], axis=0)        # (4*c1, c2p)
        out = pl.pallas_call(
            _spd_kernel_fused,
            out_shape=out_shape,
            grid_spec=pltpu.PrefetchScalarGridSpec(
                num_scalar_prefetch=0,
                grid=grid,
                in_specs=[act_spec_even, act_spec_odd,
                          pl.BlockSpec((2 * cin2, c2p), lambda i: (0, 0)),
                          bias_spec],
                out_specs=out_spec),
            compiler_params=compiler_params,
        )(x_view, x_view, w_all, bias2)
    else:
        out = pl.pallas_call(
            _spd_kernel_split,
            out_shape=out_shape,
            grid_spec=pltpu.PrefetchScalarGridSpec(
                num_scalar_prefetch=0,
                grid=grid,
                in_specs=[act_spec_even, act_spec_odd,
                          pl.BlockSpec((cin2, c2p), lambda i: (0, 0)),
                          pl.BlockSpec((cin2, c2p), lambda i: (0, 0)),
                          bias_spec],
                out_specs=out_spec),
            compiler_params=compiler_params,
        )(x_view, x_view, w_even, w_odd, bias2)

    # Drop Cout padding; single fused slice+reshape(+transpose) output pass.
    out = out[..., :c2].reshape(N, Ho, Wo, c2)
    if channels_last:
        return out
    return jnp.transpose(out, (0, 3, 1, 2))


# ----------------------------------------------------------------------------- test


def _reference(x_nchw, conv_w, bn_gamma, bn_beta, bn_mean, bn_var, eps=1e-5):
    """Pure-JAX reference mirroring the PyTorch forward (eval-mode BN)."""
    x1 = x_nchw[..., ::2, ::2]
    x2 = x_nchw[..., 1::2, ::2]
    x3 = x_nchw[..., ::2, 1::2]
    x4 = x_nchw[..., 1::2, 1::2]
    xc = jnp.concatenate([x1, x2, x3, x4], axis=1)
    w = conv_w[:, :, 0, 0]                                     # (c2, 4*c1)
    y = jnp.einsum("nchw,oc->nohw", xc, w)
    y = (y - bn_mean[None, :, None, None]) / jnp.sqrt(bn_var + eps)[None, :, None, None]
    y = y * bn_gamma[None, :, None, None] + bn_beta[None, :, None, None]
    return y * jax.nn.sigmoid(y)


if __name__ == "__main__":
    def _run_case(key, N, c1, H, W, c2, label):
        k_x, k_w, k_g, k_b, k_m, k_v = jax.random.split(key, 6)
        x = jax.random.normal(k_x, (N, c1, H, W), dtype=jnp.float32)
        conv_w = jax.random.normal(k_w, (c2, 4 * c1, 1, 1), dtype=jnp.float32) * 0.1
        bn_gamma = 1.0 + 0.05 * jax.random.normal(k_g, (c2,), dtype=jnp.float32)
        bn_beta = 0.05 * jax.random.normal(k_b, (c2,), dtype=jnp.float32)
        bn_mean = 0.05 * jax.random.normal(k_m, (c2,), dtype=jnp.float32)
        bn_var = jnp.abs(1.0 + 0.05 * jax.random.normal(k_v, (c2,), dtype=jnp.float32))

        out = jax.block_until_ready(
            spd_conv_forward(x, conv_w, bn_gamma, bn_beta, bn_mean, bn_var))
        ref = _reference(x, conv_w, bn_gamma, bn_beta, bn_mean, bn_var)
        assert out.shape == (N, c2, H // 2, W // 2), (label, out.shape)
        err = float(jnp.max(jnp.abs(out - ref)))
        # Tolerance accounts for the MXU's bf16-pass f32 matmul (kernel and XLA
        # reference each introduce O(1e-3) error at these magnitudes).
        assert err < 1e-2, (label, err)

    key = jax.random.PRNGKey(0)
    k1, k2 = jax.random.split(key)
    # small channels -> two-matmul (split-K) path
    _run_case(k1, N=2, c1=4, H=16, W=16, c2=8, label="split-K path")
    # lane-aligned channels -> fused single K=4*c1 matmul path
    _run_case(k2, N=1, c1=64, H=16, W=16, c2=16, label="fused-K path")
    print("KERNEL_OK")
</pallas_src>

<mosaic_0001>
module attributes {stable_mosaic.version = 11 : i64} {
  func.func @_spd_kernel_split(%arg0: i32, %arg1: memref<4x1x8x8xf32, #tpu.memory_space<vmem>>, %arg2: memref<4x1x8x8xf32, #tpu.memory_space<vmem>>, %arg3: memref<8x128xf32, #tpu.memory_space<vmem>>, %arg4: memref<8x128xf32, #tpu.memory_space<vmem>>, %arg5: memref<1x128xf32, #tpu.memory_space<vmem>>, %arg6: memref<4x8x128xf32, #tpu.memory_space<vmem>>) attributes {dimension_semantics = [#tpu.dimension_semantics<parallel>], iteration_bounds = array<i64: 4>, scalar_prefetch = 0 : i64, scratch_operands = 0 : i64, tpu.core_type = #tpu.core_type<tc>, window_params = [{transform_indices = @transform_0, window_bounds = array<i64: 4, 1, 8, 8>}, {transform_indices = @transform_1, window_bounds = array<i64: 4, 1, 8, 8>}, {pipeline_mode = #tpu.pipeline_mode<synchronous>, transform_indices = @transform_2, window_bounds = array<i64: 8, 128>}, {pipeline_mode = #tpu.pipeline_mode<synchronous>, transform_indices = @transform_3, window_bounds = array<i64: 8, 128>}, {pipeline_mode = #tpu.pipeline_mode<synchronous>, transform_indices = @transform_4, window_bounds = array<i64: 1, 128>}, {transform_indices = @transform_5, window_bounds = array<i64: 4, 8, 128>}]} {
    %c0 = arith.constant 0 : index
    %c0_0 = arith.constant 0 : index
    %c0_1 = arith.constant 0 : index
    %c0_2 = arith.constant 0 : index
    %0 = vector.load %arg1[%c0, %c0_0, %c0_1, %c0_2] : memref<4x1x8x8xf32, #tpu.memory_space<vmem>>, vector<4x1x8x8xf32>
    %1 = vector.shape_cast %0 : vector<4x1x8x8xf32> to vector<4x8x8xf32>
    %2 = vector.shape_cast %1 : vector<4x8x8xf32> to vector<32x8xf32>
    %c0_3 = arith.constant 0 : index
    %c0_4 = arith.constant 0 : index
    %3 = vector.load %arg3[%c0_3, %c0_4] : memref<8x128xf32, #tpu.memory_space<vmem>>, vector<8x128xf32>
    %cst = arith.constant dense<0.000000e+00> : vector<32x128xf32>
    %4 = tpu.matmul %2, %3, %cst {dimension_numbers = #tpu.dot_dimension_numbers<[1], [0], [0], [1], [0, 0, 1, 1], [], []>} : vector<32x8xf32>, vector<8x128xf32>, vector<32x128xf32> -> vector<32x128xf32>
    %c0_5 = arith.constant 0 : index
    %c0_6 = arith.constant 0 : index
    %c0_7 = arith.constant 0 : index
    %c0_8 = arith.constant 0 : index
    %5 = vector.load %arg2[%c0_5, %c0_6, %c0_7, %c0_8] : memref<4x1x8x8xf32, #tpu.memory_space<vmem>>, vector<4x1x8x8xf32>
    %6 = vector.shape_cast %5 : vector<4x1x8x8xf32> to vector<4x8x8xf32>
    %7 = vector.shape_cast %6 : vector<4x8x8xf32> to vector<32x8xf32>
    %c0_9 = arith.constant 0 : index
    %c0_10 = arith.constant 0 : index
    %8 = vector.load %arg4[%c0_9, %c0_10] : memref<8x128xf32, #tpu.memory_space<vmem>>, vector<8x128xf32>
    %cst_11 = arith.constant dense<0.000000e+00> : vector<32x128xf32>
    %9 = tpu.matmul %7, %8, %cst_11 {dimension_numbers = #tpu.dot_dimension_numbers<[1], [0], [0], [1], [0, 0, 1, 1], [], []>} : vector<32x8xf32>, vector<8x128xf32>, vector<32x128xf32> -> vector<32x128xf32>
    %10 = arith.addf %4, %9 : vector<32x128xf32>
    %c0_12 = arith.constant 0 : index
    %c0_13 = arith.constant 0 : index
    %11 = vector.load %arg5[%c0_12, %c0_13] : memref<1x128xf32, #tpu.memory_space<vmem>>, vector<1x128xf32>
    %12 = vector.broadcast %11 : vector<1x128xf32> to vector<32x128xf32>
    %13 = arith.addf %10, %12 : vector<32x128xf32>
    %14 = arith.negf %13 : vector<32x128xf32>
    %15 = math.exp %14 : vector<32x128xf32>
    %cst_14 = arith.constant 1.000000e+00 : f32
    %16 = vector.broadcast %cst_14 : f32 to vector<32x128xf32>
    %17 = arith.addf %16, %15 : vector<32x128xf32>
    %18 = arith.divf %16, %17 : vector<32x128xf32>
    %19 = arith.mulf %13, %18 : vector<32x128xf32>
    %20 = vector.shape_cast %19 : vector<32x128xf32> to vector<4x8x128xf32>
    %c0_15 = arith.constant 0 : index
    %c0_16 = arith.constant 0 : index
    %c0_17 = arith.constant 0 : index
    %21 = vector.load %arg6[%c0_15, %c0_16, %c0_17] : memref<4x8x128xf32, #tpu.memory_space<vmem>>, vector<4x8x128xf32>
    tpu.vector_store %arg6[%c0_15, %c0_16, %c0_17], %20 {strides = array<i32>} : memref<4x8x128xf32, #tpu.memory_space<vmem>>, vector<4x8x128xf32>,
    return
  }
  func.func @transform_0(%arg0: i32) -> (i32, i32, i32, i32) {
    %c0_i32 = arith.constant 0 : i32
    %c0_i32_0 = arith.constant 0 : i32
    %c0_i32_1 = arith.constant 0 : i32
    %c0_i32_2 = arith.constant 0 : i32
    return %arg0, %c0_i32, %c0_i32_0, %c0_i32_1 : i32, i32, i32, i32
  }
  func.func @transform_1(%arg0: i32) -> (i32, i32, i32, i32) {
    %c1_i32 = arith.constant 1 : i32
    %c0_i32 = arith.constant 0 : i32
    %c0_i32_0 = arith.constant 0 : i32
    %c0_i32_1 = arith.constant 0 : i32
    return %arg0, %c1_i32, %c0_i32, %c0_i32_0 : i32, i32, i32, i32
  }
  func.func @transform_2(%arg0: i32) -> (i32, i32) {
    %c0_i32 = arith.constant 0 : i32
    %c0_i32_0 = arith.constant 0 : i32
    %c0_i32_1 = arith.constant 0 : i32
    return %c0_i32, %c0_i32_0 : i32, i32
  }
  func.func @transform_3(%arg0: i32) -> (i32, i32) {
    %c0_i32 = arith.constant 0 : i32
    %c0_i32_0 = arith.constant 0 : i32
    %c0_i32_1 = arith.constant 0 : i32
    return %c0_i32, %c0_i32_0 : i32, i32
  }
  func.func @transform_4(%arg0: i32) -> (i32, i32) {
    %c0_i32 = arith.constant 0 : i32
    %c0_i32_0 = arith.constant 0 : i32
    %c0_i32_1 = arith.constant 0 : i32
    return %c0_i32, %c0_i32_0 : i32, i32
  }
  func.func @transform_5(%arg0: i32) -> (i32, i32, i32) {
    %c0_i32 = arith.constant 0 : i32
    %c0_i32_0 = arith.constant 0 : i32
    %c0_i32_1 = arith.constant 0 : i32
    return %arg0, %c0_i32, %c0_i32_0 : i32, i32, i32
  }
}

</mosaic_0001>

<bundles_post_ra>
// kernel: spd_conv_forward.1
= control target key start
LH: loop header
LB: loop body
LE: loop exit
PB: predicated region body
PF: predicated region fallthrough
CT: control target
= control target key end

     0   :  { %s748_s18 = smov 0   ;;  %s750_s19 = smov 0   ;;  %s848_s0 = inlined_call_operand.vmem [shape: f32[16,2,8,8], index: 0, kind: input, shape index: {}, may-alias: {0,1}]   ;;  %s849_s1 = inlined_call_operand.vmem [shape: f32[16,2,8,8], index: 1, kind: input, shape index: {}, may-alias: {0,1}]   ;;  %s850_s2 = inlined_call_operand.vmem [shape: f32[8,128], index: 2, kind: input, shape index: {}]   ;;  %s851_s3 = inlined_call_operand.vmem [shape: f32[8,128], index: 3, kind: input, shape index: {}]   ;;  %s852_s4 = inlined_call_operand.vmem [shape: f32[1,128], index: 4, kind: input, shape index: {}]   ;;  %s853_s5 = inlined_call_operand.vmem [shape: f32[16,8,128], index: 5, kind: output, shape index: {}]  }
   0x1   :  { %s752_s20 = smov 0  }
   0x2 LB: > { %s614_s21 = sadd.s32 4294967295, %s716_s20   ;;  %s765_s22 = sadd.s32 1, %s716_s20   ;;  %s716_s20 = sphi %s752_s20, %s857_s20   ;;  %s712_s19 = sphi %s750_s19, %s856_s19   ;;  %s708_s18 = sphi %s748_s18, %s855_s18  }
   0x3   : > { %s19_s23 = ssub.s32 %s716_s20, %s765_s22  ;;  %s22_s24 = sadd.s32 1, %s712_s19 }
   0x4   : > { %p20_p0 = scmp.eq.s32.totalorder %s19_s23, 0  ;;  %p29_p1 = scmp.ne.s32.totalorder %s712_s19, %s708_s18 }
   0x5   : > { %p30_p2 = scmp.eq.s32.totalorder %s716_s20, 0  ;;  %p617_p4 = scmp.ge.s32.totalorder %s716_s20, 4 }
   0x6   : > { %s774_s25 = scalar_select %p20_p0, %s712_s19, %s22_s24  }
   0x7   : > { %p776_p3 = por %p30_p2, %p29_p1  ;;  %179 = sbr.rel (%p617_p4) target bundleno = 28 (0x1c), region = 28 }
   0xc   : > { %182 = sbr.rel (!%p776_p3) target bundleno = 20 (0x14), region = 32  ;;  %s184_s27 = sand.u32 (%p776_p3), 1, %s712_s19  }
   0xd   : > { %s649_s28 = sshll.u32 (%p776_p3), %s716_s20, 6  ;;  %s618_s29 = sshll.u32 (%p776_p3), %s184_s27, 5 }
   0xe   : > { %s190_s7 = scalar_lea.vmem (%p776_p3), %s848_s0, %s649_s28  ;;  %s186_s8 = scalar_lea.vmem (%p776_p3), [#allocation2], %s618_s29 }
   0xf   : > { %v225_v0 = vld [vmem:[%s190_s7] sm:$0xff] (%p776_p3)  ;;  %v227_v1 = vld [vmem:[%s190_s7 + $0x10] sm:$0xff] (%p776_p3) }
  0x10   : > { %v229_v2 = vld [vmem:[%s190_s7 + $0x20] sm:$0xff] (%p776_p3)  ;;  %226 = vst [vmem:[%s186_s8] sm:$0xff] (%p776_p3), %v225_v0  ;;  %v231_v3 = vld [vmem:[%s190_s7 + $0x30] sm:$0xff] (%p776_p3) }
  0x11   : > { %228 = vst [vmem:[%s186_s8 + $0x8] sm:$0xff] %v227_v1 }
  0x12   : > { %230 = vst [vmem:[%s186_s8 + $0x10] sm:$0xff] %v229_v2 }
  0x13   : > { %232 = vst [vmem:[%s186_s8 + $0x18] sm:$0xff] %v231_v3 }
  0x14 PF: > { %238 = sbr.rel (!%p776_p3) target bundleno = 28 (0x1c), region = 70  ;;  %s240_s9 = sand.u32 (%p776_p3), 1, %s712_s19  }
  0x15   : > { %s650_s10 = sshll.u32 (%p776_p3), %s716_s20, 6  ;;  %s622_s11 = sshll.u32 (%p776_p3), %s240_s9, 5 }
  0x16   : > { %s562_s14 = scalar_lea.vmem (%p776_p3), %s849_s1, %s650_s10  ;;  %s242_s15 = scalar_lea.vmem (%p776_p3), [#allocation3], %s622_s11 }
  0x17   : > { %v625_v4 = vld [vmem:[%s562_s14 + $0x8] sm:$0xff] (%p776_p3)  ;;  %v626_v5 = vld [vmem:[%s562_s14 + $0x18] sm:$0xff] (%p776_p3) }
  0x18   : > { %v627_v6 = vld [vmem:[%s562_s14 + $0x28] sm:$0xff] (%p776_p3)  ;;  %283 = vst [vmem:[%s242_s15] sm:$0xff] (%p776_p3), %v625_v4  ;;  %v628_v7 = vld [vmem:[%s562_s14 + $0x38] sm:$0xff] (%p776_p3) }
  0x19   : > { %285 = vst [vmem:[%s242_s15 + $0x8] sm:$0xff] %v626_v5 }
  0x1a   : > { %287 = vst [vmem:[%s242_s15 + $0x10] sm:$0xff] %v627_v6 }
  0x1b   : > { %289 = vst [vmem:[%s242_s15 + $0x18] sm:$0xff] %v628_v7 }
  0x1c PF: > { %p629_p5 = scmp.ge.s32.totalorder %s716_s20, 1  ;;  %p294_p6 = scmp.lt.s32.totalorder %s716_s20, 5 }
  0x1e   : > { %p295_p7 = pnand %p629_p5, %p294_p6 }
  0x1f   : > { %s301_s26 = sand.u32 (!%p295_p7), 1, %s708_s18   ;;  %s632_s6 = sshll.u32 (!%p295_p7), %s614_s21, 2 }
  0x20   : > { %298 = sbr.rel (%p295_p7) target bundleno = 216 (0xd8), region = 108  ;;  %s630_s27 = sshll.u32 (!%p295_p7), %s301_s26, 5 }
  0x21   : > { %s310_s28 = scalar_lea.vmem (!%p295_p7), [#allocation3], %s630_s27  ;;  %s303_s29 = scalar_lea.vmem (!%p295_p7), [#allocation2], %s630_s27 }
  0x22   : > { %p342_p8 = scmp.lt.s32.totalorder (!%p295_p7), %s632_s6, 15 }
  0x25   : > { %v356_v8 = vld [vmem:[%s851_s3] sm:$0xff]  ;;  %vm357_vm0 = vcmask 64512   ;;  %v354_v11 = vld [vmem:[%s310_s28 + $0x10] sm:$0xff]  ;;  %v353_v14 = vld [vmem:[%s310_s28 + $0x8] sm:$0xff]  ;;  %s859_s6 = smov (!%p342_p8, %s632_s6), 15 }
  0x26   : > { %v351_v9 = vld [vmem:[%s850_s2] sm:$0xff]  ;;  %385 = vmatpush.msra.mxu0 %v356_v8  ;;  %651 = vmatpush.msra.mxu2 %v356_v8  ;;  %v349_v13 = vld [vmem:[%s303_s29 + $0x10] sm:$0xff]  ;;  %v355_v15 = vld [vmem:[%s310_s28 + $0x18] sm:$0xff]  ;;  %s633_s20 = sshll.u32 %s859_s6, 3 }
  0x27   : > { %426 = vmatpush.msra.mxu1 %v351_v9  ;;  %652 = vmatpush.msra.mxu3 %v351_v9  ;;  %v352_v10 = vld [vmem:[%s310_s28] sm:$0xff]  ;;  %v348_v16 = vld [vmem:[%s303_s29 + $0x8] sm:$0xff]  ;;  %v350_v17 = vld [vmem:[%s303_s29 + $0x18] sm:$0xff]  ;;  %s829_s8 = scalar_lea.vmem %s853_s5, %s633_s20 }
  0x28   : > { %v347_v12 = vld [vmem:[%s303_s29] sm:$0xff]  ;;  %634 = vmatmul.msk.f32.vlgmr.msra.gmra.mxu0 %vm357_vm0, %v352_v10  ;;  %636 = vmatmul.msk.f32.vlgmr.msra.gmra.mxu2 %vm357_vm0, %v354_v11 }
  0x29   : > { %638 = vmatmul.msk.f32.vlgmr.msra.gmra.mxu1 %vm357_vm0, %v347_v12  ;;  %640 = vmatmul.msk.f32.vlgmr.msra.gmra.mxu3 %vm357_vm0, %v349_v13  ;;  %v677_v19 = vld [vmem:[%s852_s4] ss:$0 sm:$0xff] }
  0x30   : > { %635 = vmatmul.msk.f32.gmra.mxu0 %vm357_vm0, %v353_v14  ;;  %637 = vmatmul.msk.f32.gmra.mxu2 %vm357_vm0, %v355_v15 }
  0x31   : > { %639 = vmatmul.msk.f32.gmra.mxu1 %vm357_vm0, %v348_v16  ;;  %641 = vmatmul.msk.f32.gmra.mxu3 %vm357_vm0, %v350_v17 }
  0xa5   : > { %v387_v18 = vpop.f32.mrf.mxu0 }
  0xa6   : > { %v428_v20 = vpop.f32.mrf.mxu1 }
  0xa7   : > { %v429_v21 = vadd.f32 %v428_v20, %v387_v18 }
  0xa9   : > { %v444_v22 = vadd.f32 %v677_v19, %v429_v21 }
  0xab   : > { %v642_v23 = vmul.f32 -1.442695, %v444_v22  ;;  %v393_v24 = vpop.f32.mrf.mxu2 }
  0xac   : > { %v434_v25 = vpop.f32.mrf.mxu3 }
  0xad   : > { %678 = vpow2.f32 %v642_v23  ;;  %v435_v26 = vadd.f32 %v434_v25, %v393_v24  ;;  %v390_v27 = vpop.f32.mrf.mxu0 }
  0xae   : > { %v431_v28 = vpop.f32.mrf.mxu1 }
  0xaf   : > { %v815_v29 = vadd.f32 %v677_v19, %v435_v26  ;;  %v432_v30 = vadd.f32 %v431_v28, %v390_v27 }
  0xb1   : > { %v644_v31 = vmul.f32 -1.442695, %v815_v29  ;;  %v818_v32 = vadd.f32 %v677_v19, %v432_v30 }
  0xb3   : > { %v679_v33 = vpop.eup %678  ;;  %680 = vpow2.f32 %v644_v31  ;;  %v643_v34 = vmul.f32 -1.442695, %v818_v32  ;;  %v396_v35 = vpop.f32.mrf.mxu2 }
  0xb4   : > { %v460_v36 = vadd.f32 1.0, %v679_v33  ;;  %v437_v37 = vpop.f32.mrf.mxu3 }
  0xb5   : > { %682 = vpow2.f32 %v643_v34  ;;  %v438_v38 = vadd.f32 %v437_v37, %v396_v35 }
  0xb6   : > { %684 = vrcp.f32 %v460_v36  ;;  %v475_v48 = vand.u32 2147483648, %v460_v36  ;;  %vm469_vm1 = vweird.f32 %v460_v36  ;;  %v473_v51 = vand.u32 2147483647, %v460_v36 }
  0xb7   : > { %v821_v39 = vadd.f32 %v677_v19, %v438_v38 }
  0xb8   : > { %v476_v56 = vor.u32 1.1754944e-38, %v475_v48  ;;  %vm474_vm4 = vcmp.eq.f32.partialorder %v473_v51, 8.507059e+37 }
  0xb9   : > { %v681_v40 = vpop.eup %680  ;;  %v645_v41 = vmul.f32 -1.442695, %v821_v39 }
  0xba   : > { %v462_v42 = vadd.f32 1.0, %v681_v40 }
  0xbb   : > { %v683_v43 = vpop.eup %682  ;;  %686 = vpow2.f32 %v645_v41 }
  0xbc   : > { %v685_v44 = vpop.eup %684  ;;  %688 = vrcp.f32 %v462_v42  ;;  %v461_v46 = vadd.f32 1.0, %v683_v43  ;;  %v505_v60 = vand.u32 2147483648, %v462_v42  ;;  %v503_v1 = vand.u32 2147483647, %v462_v42 }
  0xbd   : > { %v465_v45 = vmul.f32 %v685_v44, %v460_v36  ;;  %vm470_vm2 = vweird.f32 %v685_v44  ;;  %vm499_vm6 = vweird.f32 %v462_v42 }
  0xbe   : > { %690 = vrcp.f32 %v461_v46  ;;  %vm471_vm3 = vmor %vm469_vm1, %vm470_vm2  ;;  %v506_v4 = vor.u32 1.1754944e-38, %v505_v60  ;;  %v490_v5 = vand.u32 2147483648, %v461_v46  ;;  %vm484_vm8 = vweird.f32 %v461_v46 }
  0xbf   : > { %v466_v47 = vsub.f32 1.0, %v465_v45  ;;  %v488_v8 = vand.u32 2147483647, %v461_v46  ;;  %vm504_vm10 = vcmp.eq.f32.partialorder %v503_v1, 8.507059e+37 }
  0xc0   : > { %v491_v14 = vor.u32 1.1754944e-38, %v490_v5 }
  0xc1   : > { %v687_v49 = vpop.eup %686  ;;  %v467_v50 = vmul.f32 %v685_v44, %v466_v47  ;;  %vm489_vm12 = vcmp.eq.f32.partialorder %v488_v8, 8.507059e+37 }
  0xc2   : > { %v689_v52 = vpop.eup %688  ;;  %v463_v53 = vadd.f32 1.0, %v687_v49 }
  0xc3   : > { %v468_v54 = vadd.f32 %v685_v44, %v467_v50  ;;  %v495_v55 = vmul.f32 %v689_v52, %v462_v42  ;;  %vm500_vm5 = vweird.f32 %v689_v52 }
  0xc4   : > { %692 = vrcp.f32 %v463_v53  ;;  %v691_v57 = vpop.eup %690  ;;  %vm501_vm7 = vmor %vm499_vm6, %vm500_vm5  ;;  %v520_v17 = vand.u32 2147483648, %v463_v53  ;;  %v518_v20 = vand.u32 2147483647, %v463_v53  ;;  %vm514_vm14 = vweird.f32 %v463_v53 }
  0xc5   : > { %v472_v58 = vsel %vm471_vm3, %v685_v44, %v468_v54  ;;  %v496_v59 = vsub.f32 1.0, %v495_v55  ;;  %v480_v62 = vmul.f32 %v691_v57, %v461_v46  ;;  %vm485_vm9 = vweird.f32 %v691_v57 }
  0xc6   : > { %v477_v61 = vsel %vm474_vm4, %v476_v56, %v472_v58  ;;  %vm486_vm11 = vmor %vm484_vm8, %vm485_vm9  ;;  %v521_v23 = vor.u32 1.1754944e-38, %v520_v17  ;;  %vm519_vm0 = vcmp.eq.f32.partialorder %v518_v20, 8.507059e+37 }
  0xc7   : > { %v524_v63 = vmul.f32 %v477_v61, %v444_v22  ;;  %v497_v0 = vmul.f32 %v689_v52, %v496_v59  ;;  %v481_v2 = vsub.f32 1.0, %v480_v62 }
  0xc9   : > { %528 = vst [vmem:[%s829_s8] sm:$0xff] %v524_v63  ;;  %v498_v3 = vadd.f32 %v689_v52, %v497_v0  ;;  %v482_v7 = vmul.f32 %v691_v57, %v481_v2 }
  0xca   : > { %v693_v6 = vpop.eup %692 }
  0xcb   : > { %v502_v9 = vsel %vm501_vm7, %v689_v52, %v498_v3  ;;  %v510_v10 = vmul.f32 %v693_v6, %v463_v53  ;;  %v483_v12 = vadd.f32 %v691_v57, %v482_v7  ;;  %vm515_vm13 = vweird.f32 %v693_v6 }
  0xcc   : > { %v507_v11 = vsel %vm504_vm10, %v506_v4, %v502_v9  ;;  %vm516_vm15 = vmor %vm514_vm14, %vm515_vm13 }
  0xcd   : > { %v526_v13 = vmul.f32 %v507_v11, %v815_v29  ;;  %v511_v15 = vsub.f32 1.0, %v510_v10  ;;  %v487_v16 = vsel %vm486_vm11, %v691_v57, %v483_v12 }
  0xce   : > { %v492_v18 = vsel %vm489_vm12, %v491_v14, %v487_v16 }
  0xcf   : > { %530 = vst [vmem:[%s829_s8 + $0x10] sm:$0xff] %v526_v13  ;;  %v512_v19 = vmul.f32 %v693_v6, %v511_v15  ;;  %v525_v21 = vmul.f32 %v492_v18, %v818_v32 }
  0xd1   : > { %v513_v22 = vadd.f32 %v693_v6, %v512_v19  ;;  %529 = vst [vmem:[%s829_s8 + $0x8] sm:$0xff] %v525_v21 }
  0xd3   : > { %v517_v24 = vsel %vm516_vm15, %v693_v6, %v513_v22 }
  0xd4   : > { %v522_v25 = vsel %vm519_vm0, %v521_v23, %v517_v24 }
  0xd5   : > { %v527_v26 = vmul.f32 %v522_v25, %v821_v39 }
  0xd7   : > { %531 = vst [vmem:[%s829_s8 + $0x18] sm:$0xff] %v527_v26 }
  0xd8 PF: > { %p12_p9 = scmp.ge.s32.totalorder %s765_s22, 6   ;;  %s855_s18 = smov %s712_s19 }
  0xd9   : > { %s856_s19 = smov %s774_s25  ;;  %s857_s20 = smov %s765_s22 }
  0xda   :  { %14 = sbr.rel (!%p12_p9) target bundleno = 2 (0x2), region = 159 }

</bundles_post_ra>
